<compile_context>
chip_gen: v7x
topology: tpu7x:2x2x1
jax: 0.10.0
libtpu: 0.0.40
codegen_flags: <defaults>
</compile_context>

<pallas_src>
import jax
import jax.numpy as jnp
from jax.experimental import pallas as pl
from jax.experimental.pallas import tpu as pltpu


NUM_CLASSES = 10
EMBED_DIM = 64
RAND_DIM = 100           # random_input_size
K_IN = 128               # fused layer-1 contraction: 100 noise + 10 one-hot + 18 zero
HIDDEN = 128
OUT_DIM = 784
BN_EPS = 1e-5
LEAKY_SLOPE = 0.3        # matches nn.LeakyReLU(0.3) in the reference module

TILE_B = 1024            # large tiles amortize per-grid-step overhead


def _leaky_relu(x, slope=LEAKY_SLOPE):
    return jnp.where(x > 0, x, slope * x)


def _round_up(n, m):
    return ((n + m - 1) // m) * m


def generator_kernel(x_ref, w1_ref, vecs_ref, w2_ref, w3_ref, w4_ref, b4_ref,
                     o_ref):
    """One batch tile of the 4-layer generator MLP, fully resident in VMEM."""
    # Packed per-feature vectors: rows 0..8 = b1,s1,t1,b2,s2,t2,b3,s3,t3.
    b1 = vecs_ref[0:1, :]
    s1 = vecs_ref[1:2, :]
    t1 = vecs_ref[2:3, :]
    b2 = vecs_ref[3:4, :]
    s2 = vecs_ref[4:5, :]
    t2 = vecs_ref[5:6, :]
    b3 = vecs_ref[6:7, :]
    s3 = vecs_ref[7:8, :]
    t3 = vecs_ref[8:9, :]

    # --- layer 1 (fused noise + embedding, single K=128 bf16 matmul) --------
    h = jnp.dot(x_ref[...], w1_ref[...],
                preferred_element_type=jnp.float32)        # [tb, 128] f32
    h = _leaky_relu(h + b1)
    h = h * s1 + t1                                        # BatchNorm1d (eval)

    # --- layer 2 -------------------------------------------------------------
    h = jnp.dot(h.astype(jnp.bfloat16), w2_ref[...],
                preferred_element_type=jnp.float32)
    h = _leaky_relu(h + b2)
    h = h * s2 + t2

    # --- layer 3 -------------------------------------------------------------
    h = jnp.dot(h.astype(jnp.bfloat16), w3_ref[...],
                preferred_element_type=jnp.float32)
    h = _leaky_relu(h + b3)
    h = h * s3 + t3

    # --- layer 4 + Tanh (bf16 epilogue, bf16 store) --------------------------
    h = jnp.dot(h.astype(jnp.bfloat16), w4_ref[...],
                preferred_element_type=jnp.float32)        # [tb, 784] f32
    o_ref[...] = jnp.tanh((h + b4_ref[...]).astype(jnp.bfloat16))


def _bn_fold(bn):
    """Fold eval-mode BatchNorm1d into per-feature scale/shift, shape [H]."""
    scale = bn["gamma"] / jnp.sqrt(bn["var"] + BN_EPS)
    shift = bn["beta"] - bn["mean"] * scale
    return scale.astype(jnp.float32), shift.astype(jnp.float32)


def _choose_tiling(B, tile_b=TILE_B):
    """Pick a batch tile size; keep >= 2 tiles when the batch allows so both
    v7x TensorCores get work (grid axis is 'parallel')."""
    tb = min(tile_b, _round_up(B, 8))
    b_pad = _round_up(B, tb)
    if b_pad // tb == 1 and B > 8:
        tb = _round_up((B + 1) // 2, 8)
        b_pad = 2 * tb
    return tb, b_pad


def generator_forward(x, c, params, tile_b=TILE_B):
    """x: [B, 100] f32 noise, c: [B] int32 labels in [0, 10).

    Returns [B, 784] bfloat16 (tanh output; cast to f32 outside if needed).
    """
    B = x.shape[0]
    tb, b_pad = _choose_tiling(B, tile_b)

    # Fused layer-1 input: [noise | one_hot(label) | zeros] in bf16, [B, 128].
    one_hot = jax.nn.one_hot(c, NUM_CLASSES, dtype=jnp.float32)        # [B, 10]
    zeros_tail = jnp.zeros((B, K_IN - RAND_DIM - NUM_CLASSES), jnp.float32)
    x_in = jnp.concatenate([x, one_hot, zeros_tail], axis=1).astype(jnp.bfloat16)
    if b_pad != B:
        x_in = jnp.pad(x_in, ((0, b_pad - B), (0, 0)))

    # Fused layer-1 weight: [W1_noise ; embedding @ W1_emb ; zeros] -> [128,128].
    emb_proj = jnp.dot(params["embedding"].astype(jnp.float32),
                       params["w1_e"].astype(jnp.float32))             # [10, 128]
    w1 = jnp.concatenate(
        [params["w1_x"].astype(jnp.float32), emb_proj,
         jnp.zeros((K_IN - RAND_DIM - NUM_CLASSES, HIDDEN), jnp.float32)],
        axis=0).astype(jnp.bfloat16)                                   # [128, 128]

    # Pack biases + folded BatchNorm scale/shift into one [16, 128] f32 block.
    s1, t1 = _bn_fold(params["bn1"])
    s2, t2 = _bn_fold(params["bn2"])
    s3, t3 = _bn_fold(params["bn3"])
    vecs = jnp.zeros((16, HIDDEN), jnp.float32)
    rows = [params["b1"].reshape(-1), s1, t1,
            params["b2"].reshape(-1), s2, t2,
            params["b3"].reshape(-1), s3, t3]
    vecs = vecs.at[:9, :].set(jnp.stack(rows, axis=0))

    w2, w3, w4 = params["w2"], params["w3"], params["w4"]
    b4 = params["b4"].reshape(1, OUT_DIM).astype(jnp.float32)

    grid = (b_pad // tb,)
    const = lambda i: (0, 0)
    batch = lambda i: (i, 0)

    weight_args = (w1, vecs, w2, w3, w4, b4)
    weight_bytes = sum(int(a.size) * a.dtype.itemsize for a in weight_args)
    flops = 2 * b_pad * HIDDEN * (K_IN + 2 * HIDDEN + OUT_DIM)
    bytes_accessed = b_pad * (K_IN * 2 + OUT_DIM * 2) + weight_bytes

    out = pl.pallas_call(
        generator_kernel,
        out_shape=jax.ShapeDtypeStruct((b_pad, OUT_DIM), jnp.bfloat16),
        grid=grid,
        in_specs=[
            pl.BlockSpec((tb, K_IN), batch),            # fused input
            pl.BlockSpec((K_IN, HIDDEN), const),        # fused w1
            pl.BlockSpec((16, HIDDEN), const),          # packed biases / BN vecs
            pl.BlockSpec((HIDDEN, HIDDEN), const),      # w2
            pl.BlockSpec((HIDDEN, HIDDEN), const),      # w3
            pl.BlockSpec((HIDDEN, OUT_DIM), const),     # w4
            pl.BlockSpec((1, OUT_DIM), const),          # b4
        ],
        out_specs=pl.BlockSpec((tb, OUT_DIM), batch),
        compiler_params=pltpu.CompilerParams(
            dimension_semantics=("parallel",)),
        cost_estimate=pl.CostEstimate(
            flops=int(flops),
            transcendentals=int(b_pad * OUT_DIM),
            bytes_accessed=int(bytes_accessed)),
    )(x_in, w1, vecs, w2, w3, w4, b4)
    return out[:B]


def init_params(key):
    """Parameter shapes matching the PyTorch module.

    Linear weights are stored as [in_features, out_features] (transposed vs.
    PyTorch's [out, in]) in bfloat16; layer 1 is split into its noise part
    w1_x [100,128] and its embedding part w1_e [64,128].  BatchNorm running
    statistics are lightly randomized so the eval-mode affine path is actually
    exercised.
    """
    keys = jax.random.split(key, 12)

    def linear(kw, kb, fan_in, fan_out):
        bound = 1.0 / jnp.sqrt(jnp.float32(fan_in))
        w = jax.random.uniform(kw, (fan_in, fan_out), jnp.float32, -bound, bound)
        b = jax.random.uniform(kb, (1, fan_out), jnp.float32, -bound, bound)
        return w.astype(jnp.bfloat16), b

    def bn(k):
        k1, k2, k3, k4 = jax.random.split(k, 4)
        return {
            "gamma": jax.random.uniform(k1, (HIDDEN,), jnp.float32, 0.8, 1.2),
            "beta": jax.random.uniform(k2, (HIDDEN,), jnp.float32, -0.1, 0.1),
            "mean": jax.random.uniform(k3, (HIDDEN,), jnp.float32, -0.1, 0.1),
            "var": jax.random.uniform(k4, (HIDDEN,), jnp.float32, 0.8, 1.2),
        }

    emb = jax.random.normal(keys[0], (NUM_CLASSES, EMBED_DIM), jnp.float32)

    bound1 = 1.0 / jnp.sqrt(jnp.float32(RAND_DIM + EMBED_DIM))
    w1_full = jax.random.uniform(keys[1], (RAND_DIM + EMBED_DIM, HIDDEN),
                                 jnp.float32, -bound1, bound1)
    b1 = jax.random.uniform(keys[2], (1, HIDDEN), jnp.float32, -bound1, bound1)
    w1_x = w1_full[:RAND_DIM].astype(jnp.bfloat16)
    w1_e = w1_full[RAND_DIM:].astype(jnp.bfloat16)

    w2, b2 = linear(keys[3], keys[4], HIDDEN, HIDDEN)
    w3, b3 = linear(keys[5], keys[6], HIDDEN, HIDDEN)
    w4, b4 = linear(keys[7], keys[8], HIDDEN, OUT_DIM)

    return {
        "embedding": emb,
        "w1_x": w1_x, "w1_e": w1_e, "b1": b1,
        "w2": w2, "b2": b2,
        "w3": w3, "b3": b3,
        "w4": w4, "b4": b4,
        "bn1": bn(keys[9]), "bn2": bn(keys[10]), "bn3": bn(keys[11]),
    }


def _reference_forward(x, c, params):
    """Pure-JAX f32 reference with the module's original structure
    (embedding lookup + concat + Linear/LeakyReLU/BatchNorm(eval)/Tanh)."""
    emb = jnp.take(params["embedding"], c, axis=0)                    # [B, 64]
    h = jnp.concatenate([x, emb], axis=1)                             # [B, 164]
    w1 = jnp.concatenate([params["w1_x"], params["w1_e"]],
                         axis=0).astype(jnp.float32)
    s1, t1 = _bn_fold(params["bn1"])
    s2, t2 = _bn_fold(params["bn2"])
    s3, t3 = _bn_fold(params["bn3"])

    h = _leaky_relu(h @ w1 + params["b1"])
    h = h * s1 + t1
    h = _leaky_relu(h @ params["w2"].astype(jnp.float32) + params["b2"])
    h = h * s2 + t2
    h = _leaky_relu(h @ params["w3"].astype(jnp.float32) + params["b3"])
    h = h * s3 + t3
    return jnp.tanh(h @ params["w4"].astype(jnp.float32) + params["b4"])


if __name__ == "__main__":
    key = jax.random.PRNGKey(0)
    k_params, k_x, k_c = jax.random.split(key, 3)

    B = 8
    params = init_params(k_params)
    x = jax.random.normal(k_x, (B, RAND_DIM), jnp.float32)
    c = jax.random.randint(k_c, (B,), 0, NUM_CLASSES, jnp.int32)

    out = generator_forward(x, c, params)
    out = jax.block_until_ready(out)

    ref = _reference_forward(x, c, params)
    assert out.shape == (B, OUT_DIM), out.shape
    assert out.dtype == jnp.bfloat16, out.dtype
    max_err = float(jnp.max(jnp.abs(out.astype(jnp.float32) - ref)))
    # Kernel uses bf16 matmul inputs / bf16 tanh epilogue / bf16 output with
    # f32 accumulation; tolerance covers the mixed-precision rounding.
    assert max_err < 4e-2, f"mismatch vs reference: max abs err {max_err}"

    print("KERNEL_OK")
</pallas_src>

<mosaic_0001>
module attributes {stable_mosaic.version = 11 : i64} {
  func.func @generator_kernel(%arg0: i32, %arg1: memref<8x128xbf16, #tpu.memory_space<vmem>>, %arg2: memref<128x128xbf16, #tpu.memory_space<vmem>>, %arg3: memref<16x128xf32, #tpu.memory_space<vmem>>, %arg4: memref<128x128xbf16, #tpu.memory_space<vmem>>, %arg5: memref<128x128xbf16, #tpu.memory_space<vmem>>, %arg6: memref<128x784xbf16, #tpu.memory_space<vmem>>, %arg7: memref<1x784xf32, #tpu.memory_space<vmem>>, %arg8: memref<8x784xbf16, #tpu.memory_space<vmem>>) attributes {dimension_semantics = [#tpu.dimension_semantics<parallel>], iteration_bounds = array<i64: 1>, scalar_prefetch = 0 : i64, scratch_operands = 0 : i64, tpu.core_type = #tpu.core_type<tc>, window_params = [{transform_indices = @transform_0, window_bounds = array<i64: 8, 128>}, {pipeline_mode = #tpu.pipeline_mode<synchronous>, transform_indices = @transform_1, window_bounds = array<i64: 128, 128>}, {pipeline_mode = #tpu.pipeline_mode<synchronous>, transform_indices = @transform_2, window_bounds = array<i64: 16, 128>}, {pipeline_mode = #tpu.pipeline_mode<synchronous>, transform_indices = @transform_3, window_bounds = array<i64: 128, 128>}, {pipeline_mode = #tpu.pipeline_mode<synchronous>, transform_indices = @transform_4, window_bounds = array<i64: 128, 128>}, {pipeline_mode = #tpu.pipeline_mode<synchronous>, transform_indices = @transform_5, window_bounds = array<i64: 128, 784>}, {pipeline_mode = #tpu.pipeline_mode<synchronous>, transform_indices = @transform_6, window_bounds = array<i64: 1, 784>}, {transform_indices = @transform_7, window_bounds = array<i64: 8, 784>}]} {
    %c0 = arith.constant 0 : index
    %c0_0 = arith.constant 0 : index
    %0 = vector.load %arg3[%c0, %c0_0] : memref<16x128xf32, #tpu.memory_space<vmem>>, vector<1x128xf32>
    %c1 = arith.constant 1 : index
    %c0_1 = arith.constant 0 : index
    %1 = vector.load %arg3[%c1, %c0_1] : memref<16x128xf32, #tpu.memory_space<vmem>>, vector<1x128xf32>
    %c2 = arith.constant 2 : index
    %c0_2 = arith.constant 0 : index
    %2 = vector.load %arg3[%c2, %c0_2] : memref<16x128xf32, #tpu.memory_space<vmem>>, vector<1x128xf32>
    %c3 = arith.constant 3 : index
    %c0_3 = arith.constant 0 : index
    %3 = vector.load %arg3[%c3, %c0_3] : memref<16x128xf32, #tpu.memory_space<vmem>>, vector<1x128xf32>
    %c4 = arith.constant 4 : index
    %c0_4 = arith.constant 0 : index
    %4 = vector.load %arg3[%c4, %c0_4] : memref<16x128xf32, #tpu.memory_space<vmem>>, vector<1x128xf32>
    %c5 = arith.constant 5 : index
    %c0_5 = arith.constant 0 : index
    %5 = vector.load %arg3[%c5, %c0_5] : memref<16x128xf32, #tpu.memory_space<vmem>>, vector<1x128xf32>
    %c6 = arith.constant 6 : index
    %c0_6 = arith.constant 0 : index
    %6 = vector.load %arg3[%c6, %c0_6] : memref<16x128xf32, #tpu.memory_space<vmem>>, vector<1x128xf32>
    %c7 = arith.constant 7 : index
    %c0_7 = arith.constant 0 : index
    %7 = vector.load %arg3[%c7, %c0_7] : memref<16x128xf32, #tpu.memory_space<vmem>>, vector<1x128xf32>
    %c8 = arith.constant 8 : index
    %c0_8 = arith.constant 0 : index
    %8 = vector.load %arg3[%c8, %c0_8] : memref<16x128xf32, #tpu.memory_space<vmem>>, vector<1x128xf32>
    %c0_9 = arith.constant 0 : index
    %c0_10 = arith.constant 0 : index
    %9 = vector.load %arg1[%c0_9, %c0_10] : memref<8x128xbf16, #tpu.memory_space<vmem>>, vector<8x128xbf16>
    %c0_11 = arith.constant 0 : index
    %c0_12 = arith.constant 0 : index
    %10 = vector.load %arg2[%c0_11, %c0_12] : memref<128x128xbf16, #tpu.memory_space<vmem>>, vector<128x128xbf16>
    %cst = arith.constant dense<0.000000e+00> : vector<8x128xf32>
    %11 = tpu.matmul %9, %10, %cst {dimension_numbers = #tpu.dot_dimension_numbers<[1], [0], [0], [1], [0, 0, 1, 1], [], []>} : vector<8x128xbf16>, vector<128x128xbf16>, vector<8x128xf32> -> vector<8x128xf32>
    %12 = vector.broadcast %0 : vector<1x128xf32> to vector<8x128xf32>
    %13 = arith.addf %11, %12 : vector<8x128xf32>
    %cst_13 = arith.constant 0.000000e+00 : f32
    %14 = vector.broadcast %cst_13 : f32 to vector<8x128xf32>
    %15 = arith.cmpf ogt, %13, %14 : vector<8x128xf32>
    %cst_14 = arith.constant 3.000000e-01 : f32
    %16 = vector.broadcast %cst_14 : f32 to vector<8x128xf32>
    %17 = arith.mulf %16, %13 : vector<8x128xf32>
    %18 = arith.select %15, %13, %17 : vector<8x128xi1>, vector<8x128xf32>
    %19 = vector.broadcast %1 : vector<1x128xf32> to vector<8x128xf32>
    %20 = arith.mulf %18, %19 : vector<8x128xf32>
    %21 = vector.broadcast %2 : vector<1x128xf32> to vector<8x128xf32>
    %22 = arith.addf %20, %21 : vector<8x128xf32>
    %23 = arith.truncf %22 : vector<8x128xf32> to vector<8x128xbf16>
    %c0_15 = arith.constant 0 : index
    %c0_16 = arith.constant 0 : index
    %24 = vector.load %arg4[%c0_15, %c0_16] : memref<128x128xbf16, #tpu.memory_space<vmem>>, vector<128x128xbf16>
    %cst_17 = arith.constant dense<0.000000e+00> : vector<8x128xf32>
    %25 = tpu.matmul %23, %24, %cst_17 {dimension_numbers = #tpu.dot_dimension_numbers<[1], [0], [0], [1], [0, 0, 1, 1], [], []>} : vector<8x128xbf16>, vector<128x128xbf16>, vector<8x128xf32> -> vector<8x128xf32>
    %26 = vector.broadcast %3 : vector<1x128xf32> to vector<8x128xf32>
    %27 = arith.addf %25, %26 : vector<8x128xf32>
    %cst_18 = arith.constant 0.000000e+00 : f32
    %28 = vector.broadcast %cst_18 : f32 to vector<8x128xf32>
    %29 = arith.cmpf ogt, %27, %28 : vector<8x128xf32>
    %cst_19 = arith.constant 3.000000e-01 : f32
    %30 = vector.broadcast %cst_19 : f32 to vector<8x128xf32>
    %31 = arith.mulf %30, %27 : vector<8x128xf32>
    %32 = arith.select %29, %27, %31 : vector<8x128xi1>, vector<8x128xf32>
    %33 = vector.broadcast %4 : vector<1x128xf32> to vector<8x128xf32>
    %34 = arith.mulf %32, %33 : vector<8x128xf32>
    %35 = vector.broadcast %5 : vector<1x128xf32> to vector<8x128xf32>
    %36 = arith.addf %34, %35 : vector<8x128xf32>
    %37 = arith.truncf %36 : vector<8x128xf32> to vector<8x128xbf16>
    %c0_20 = arith.constant 0 : index
    %c0_21 = arith.constant 0 : index
    %38 = vector.load %arg5[%c0_20, %c0_21] : memref<128x128xbf16, #tpu.memory_space<vmem>>, vector<128x128xbf16>
    %cst_22 = arith.constant dense<0.000000e+00> : vector<8x128xf32>
    %39 = tpu.matmul %37, %38, %cst_22 {dimension_numbers = #tpu.dot_dimension_numbers<[1], [0], [0], [1], [0, 0, 1, 1], [], []>} : vector<8x128xbf16>, vector<128x128xbf16>, vector<8x128xf32> -> vector<8x128xf32>
    %40 = vector.broadcast %6 : vector<1x128xf32> to vector<8x128xf32>
    %41 = arith.addf %39, %40 : vector<8x128xf32>
    %cst_23 = arith.constant 0.000000e+00 : f32
    %42 = vector.broadcast %cst_23 : f32 to vector<8x128xf32>
    %43 = arith.cmpf ogt, %41, %42 : vector<8x128xf32>
    %cst_24 = arith.constant 3.000000e-01 : f32
    %44 = vector.broadcast %cst_24 : f32 to vector<8x128xf32>
    %45 = arith.mulf %44, %41 : vector<8x128xf32>
    %46 = arith.select %43, %41, %45 : vector<8x128xi1>, vector<8x128xf32>
    %47 = vector.broadcast %7 : vector<1x128xf32> to vector<8x128xf32>
    %48 = arith.mulf %46, %47 : vector<8x128xf32>
    %49 = vector.broadcast %8 : vector<1x128xf32> to vector<8x128xf32>
    %50 = arith.addf %48, %49 : vector<8x128xf32>
    %51 = arith.truncf %50 : vector<8x128xf32> to vector<8x128xbf16>
    %c0_25 = arith.constant 0 : index
    %c0_26 = arith.constant 0 : index
    %52 = vector.load %arg6[%c0_25, %c0_26] : memref<128x784xbf16, #tpu.memory_space<vmem>>, vector<128x784xbf16>
    %cst_27 = arith.constant dense<0.000000e+00> : vector<8x784xf32>
    %53 = tpu.matmul %51, %52, %cst_27 {dimension_numbers = #tpu.dot_dimension_numbers<[1], [0], [0], [1], [0, 0, 1, 1], [], []>} : vector<8x128xbf16>, vector<128x784xbf16>, vector<8x784xf32> -> vector<8x784xf32>
    %c0_28 = arith.constant 0 : index
    %c0_29 = arith.constant 0 : index
    %54 = vector.load %arg7[%c0_28, %c0_29] : memref<1x784xf32, #tpu.memory_space<vmem>>, vector<1x784xf32>
    %55 = vector.broadcast %54 : vector<1x784xf32> to vector<8x784xf32>
    %56 = arith.addf %53, %55 : vector<8x784xf32>
    %57 = arith.truncf %56 : vector<8x784xf32> to vector<8x784xbf16>
    %58 = math.tanh %57 : vector<8x784xbf16>
    %c0_30 = arith.constant 0 : index
    %c0_31 = arith.constant 0 : index
    %59 = vector.load %arg8[%c0_30, %c0_31] : memref<8x784xbf16, #tpu.memory_space<vmem>>, vector<8x784xbf16>
    tpu.vector_store %arg8[%c0_30, %c0_31], %58 {strides = array<i32>} : memref<8x784xbf16, #tpu.memory_space<vmem>>, vector<8x784xbf16>,
    return
  }
  func.func @transform_0(%arg0: i32) -> (i32, i32) {
    %c0_i32 = arith.constant 0 : i32
    %c0_i32_0 = arith.constant 0 : i32
    return %arg0, %c0_i32 : i32, i32
  }
  func.func @transform_1(%arg0: i32) -> (i32, i32) {
    %c0_i32 = arith.constant 0 : i32
    %c0_i32_0 = arith.constant 0 : i32
    %c0_i32_1 = arith.constant 0 : i32
    return %c0_i32, %c0_i32_0 : i32, i32
  }
  func.func @transform_2(%arg0: i32) -> (i32, i32) {
    %c0_i32 = arith.constant 0 : i32
    %c0_i32_0 = arith.constant 0 : i32
    %c0_i32_1 = arith.constant 0 : i32
    return %c0_i32, %c0_i32_0 : i32, i32
  }
  func.func @transform_3(%arg0: i32) -> (i32, i32) {
    %c0_i32 = arith.constant 0 : i32
    %c0_i32_0 = arith.constant 0 : i32
    %c0_i32_1 = arith.constant 0 : i32
    return %c0_i32, %c0_i32_0 : i32, i32
  }
  func.func @transform_4(%arg0: i32) -> (i32, i32) {
    %c0_i32 = arith.constant 0 : i32
    %c0_i32_0 = arith.constant 0 : i32
    %c0_i32_1 = arith.constant 0 : i32
    return %c0_i32, %c0_i32_0 : i32, i32
  }
  func.func @transform_5(%arg0: i32) -> (i32, i32) {
    %c0_i32 = arith.constant 0 : i32
    %c0_i32_0 = arith.constant 0 : i32
    %c0_i32_1 = arith.constant 0 : i32
    return %c0_i32, %c0_i32_0 : i32, i32
  }
  func.func @transform_6(%arg0: i32) -> (i32, i32) {
    %c0_i32 = arith.constant 0 : i32
    %c0_i32_0 = arith.constant 0 : i32
    %c0_i32_1 = arith.constant 0 : i32
    return %c0_i32, %c0_i32_0 : i32, i32
  }
  func.func @transform_7(%arg0: i32) -> (i32, i32) {
    %c0_i32 = arith.constant 0 : i32
    %c0_i32_0 = arith.constant 0 : i32
    return %arg0, %c0_i32 : i32, i32
  }
}

</mosaic_0001>

<bundles_post_ra>
// kernel: tpu_custom_call.1
= control target key start
LH: loop header
LB: loop body
LE: loop exit
PB: predicated region body
PF: predicated region fallthrough
CT: control target
= control target key end

     0   :  { %v1366_v1 = vmov 0.0   ;;  %vm1367_vm0 = vmmov 0   ;;  %s1735_s0 = inlined_call_operand.vmem [shape: bf16[8,128], index: 0, kind: input, shape index: {}]   ;;  %s1736_s1 = inlined_call_operand.vmem [shape: bf16[128,128], index: 1, kind: input, shape index: {}]   ;;  %s1737_s2 = inlined_call_operand.vmem [shape: f32[16,128], index: 2, kind: input, shape index: {}]   ;;  %s1738_s3 = inlined_call_operand.vmem [shape: bf16[128,128], index: 3, kind: input, shape index: {}]   ;;  %s1739_s4 = inlined_call_operand.vmem [shape: bf16[128,128], index: 4, kind: input, shape index: {}]   ;;  %s1740_s5 = inlined_call_operand.vmem [shape: bf16[128,784], index: 5, kind: input, shape index: {}]   ;;  %s1741_s6 = inlined_call_operand.vmem [shape: f32[1,784], index: 6, kind: input, shape index: {}]   ;;  %s1742_s7 = inlined_call_operand.hbm [shape: bf16[8,784], index: 7, kind: output, shape index: {}]  }
   0x1   :  { %v1224_v0 = vld [vmem:[%s1736_s1] sm:$0xff]   ;;  %1140 = vmatprep.subr.bf16.mxu0 %v1366_v1  ;;  %1160 = vmatprep.subr.bf16.mxu1 %v1366_v1  ;;  %v1225_v2 = vld [vmem:[%s1736_s1 + $0x8] sm:$0xff]   ;;  %v1226_v3 = vld [vmem:[%s1736_s1 + $0x10] sm:$0xff]  }
   0x2   :  { %1141 = vmatpush3.bf16.msra.mxu0 %v1224_v0  ;;  %1156 = vmatprep.mubr.msk.bf16.mxu0 %vm1367_vm0, %v1366_v1  ;;  %v1232_v4 = vld [vmem:[%s1738_s3] sm:$0xff]   ;;  %v1227_v5 = vld [vmem:[%s1736_s1 + $0x18] sm:$0xff]   ;;  %v1233_v6 = vld [vmem:[%s1738_s3 + $0x8] sm:$0xff]  }
   0x3   :  { %1142 = vmatprep.subr.bf16.mxu0 %v1366_v1  ;;  %1176 = vmatprep.mubr.msk.bf16.mxu1 %vm1367_vm0, %v1366_v1  ;;  %v1228_v7 = vld [vmem:[%s1736_s1 + $0x20] sm:$0xff]   ;;  %v1234_v8 = vld [vmem:[%s1738_s3 + $0x10] sm:$0xff]   ;;  %v1229_v9 = vld [vmem:[%s1736_s1 + $0x28] sm:$0xff]  }
   0x4   :  { %1161 = vmatpush3.bf16.msra.mxu1 %v1232_v4  ;;  %v1235_v10 = vld [vmem:[%s1738_s3 + $0x18] sm:$0xff]   ;;  %v1230_v11 = vld [vmem:[%s1736_s1 + $0x30] sm:$0xff]   ;;  %v1236_v12 = vld [vmem:[%s1738_s3 + $0x20] sm:$0xff]  }
   0x5   :  { %1162 = vmatprep.subr.bf16.mxu1 %v1366_v1  ;;  %v1231_v13 = vld [vmem:[%s1736_s1 + $0x38] sm:$0xff]   ;;  %v37_v14 = vld [vmem:[%s1735_s0] sm:$0xf] }
   0x6   :  { %1143 = vmatpush3.bf16.msra.mxu0 %v1225_v2 }
   0x7   :  { %1144 = vmatprep.subr.bf16.mxu0 %v1366_v1 }
   0x8   :  { %1163 = vmatpush3.bf16.msra.mxu1 %v1233_v6 }
   0x9   :  { %1164 = vmatprep.subr.bf16.mxu1 %v1366_v1 }
   0xa   :  { %1145 = vmatpush3.bf16.msra.mxu0 %v1226_v3 }
   0xb   :  { %1146 = vmatprep.subr.bf16.mxu0 %v1366_v1 }
   0xc   :  { %1165 = vmatpush3.bf16.msra.mxu1 %v1234_v8 }
   0xd   :  { %1166 = vmatprep.subr.bf16.mxu1 %v1366_v1 }
   0xe   :  { %1147 = vmatpush3.bf16.msra.mxu0 %v1227_v5 }
   0xf   :  { %1148 = vmatprep.subr.bf16.mxu0 %v1366_v1 }
  0x10   :  { %1167 = vmatpush3.bf16.msra.mxu1 %v1235_v10 }
  0x11   :  { %1168 = vmatprep.subr.bf16.mxu1 %v1366_v1 }
  0x12   :  { %1149 = vmatpush3.bf16.msra.mxu0 %v1228_v7 }
  0x13   :  { %1150 = vmatprep.subr.bf16.mxu0 %v1366_v1 }
  0x14   :  { %1169 = vmatpush3.bf16.msra.mxu1 %v1236_v12 }
  0x15   :  { %1170 = vmatprep.subr.bf16.mxu1 %v1366_v1 }
  0x16   :  { %1151 = vmatpush3.bf16.msra.mxu0 %v1229_v9 }
  0x17   :  { %1152 = vmatprep.subr.bf16.mxu0 %v1366_v1 }
  0x1a   :  { %1153 = vmatpush3.bf16.msra.mxu0 %v1230_v11 }
  0x1b   :  { %1154 = vmatprep.subr.bf16.mxu0 %v1366_v1 }
  0x1e   :  { %1155 = vmatpush3.bf16.msra.mxu0 %v1231_v13 }
  0x1f   :  { %1180 = vmatprep.subr.bf16.mxu0 %v1366_v1 }
  0x21   :  { %1157 = vmatmul.mubr.bf16.vlgmr.msra.gmra.mrb[0].mxu0 %v37_v14 }
  0x22   :  { %1196 = vmatprep.mubr.msk.bf16.mxu0 %vm1367_vm0, %v1366_v1 }
  0x23   :  { %12 = vsyncpa [#allocation3], 0  ;;  %v1237_v15 = vld [vmem:[%s1738_s3 + $0x28] sm:$0xff]   ;;  %v1238_v16 = vld [vmem:[%s1738_s3 + $0x30] sm:$0xff]   ;;  %vm995_vm4 = vcmask 125952  }
  0x24   :  { %1171 = vmatpush3.bf16.msra.mxu1 %v1237_v15  ;;  %v1239_v17 = vld [vmem:[%s1738_s3 + $0x38] sm:$0xff]   ;;  %v1240_v18 = vld [vmem:[%s1739_s4] sm:$0xff]   ;;  %v1241_v19 = vld [vmem:[%s1739_s4 + $0x8] sm:$0xff]  }
  0x25   :  { %1172 = vmatprep.subr.bf16.mxu1 %v1366_v1  ;;  %1181 = vmatpush3.bf16.msra.mxu0 %v1240_v18  ;;  %v1242_v20 = vld [vmem:[%s1739_s4 + $0x10] sm:$0xff]   ;;  %v1243_v21 = vld [vmem:[%s1739_s4 + $0x18] sm:$0xff]   ;;  %v1244_v22 = vld [vmem:[%s1739_s4 + $0x20] sm:$0xff]  }
  0x26   :  { %1182 = vmatprep.subr.bf16.mxu0 %v1366_v1  ;;  %v1011_v23 = vld [vmem:[%s1737_s2] ss:$0 sm:$0xff]  ;;  %v1020_v28 = vld [vmem:[%s1737_s2 + $0x1] ss:$0 sm:$0xff]  ;;  %v1021_v32 = vld [vmem:[%s1737_s2 + $0x2] ss:$0 sm:$0xff] }
  0x27   :  { %v1245_v36 = vld [vmem:[%s1739_s4 + $0x28] sm:$0xff]   ;;  %v1246_v37 = vld [vmem:[%s1739_s4 + $0x30] sm:$0xff]   ;;  %v1247_v38 = vld [vmem:[%s1739_s4 + $0x38] sm:$0xff]  }
  0x28   :  { %1173 = vmatpush3.bf16.msra.mxu1 %v1238_v16  ;;  %v1248_v39 = vld [vmem:[%s1740_s5] ss:$28 sps:$4 sm:$0xff]   ;;  %v1253_v41 = vld [vmem:[%s1740_s5 + $0xc] ss:$28 sps:$4 sm:$0xff]   ;;  %v1254_v43 = vld [vmem:[%s1740_s5 + $0x38] ss:$28 sps:$4 sm:$0xff]  }
  0x29   :  { %1174 = vmatprep.subr.bf16.mxu1 %v1366_v1  ;;  %1183 = vmatpush3.bf16.msra.mxu0 %v1241_v19  ;;  %v1250_v40 = vld [vmem:[%s1740_s5 + $0x4] ss:$28 sps:$4 sm:$0xff]   ;;  %v1256_v42 = vld [vmem:[%s1740_s5 + $0x3c] ss:$28 sps:$4 sm:$0xff]   ;;  %v1262_v44 = vld [vmem:[%s1740_s5 + $0x74] ss:$28 sps:$4 sm:$0xff]  }
  0x2a   :  { %1184 = vmatprep.subr.bf16.mxu0 %v1366_v1  ;;  %v1260_v45 = vld [vmem:[%s1740_s5 + $0x70] ss:$28 sps:$4 sm:$0xff]   ;;  %v1266_v47 = vld [vmem:[%s1740_s5 + $0xa8] ss:$28 sps:$4 sm:$0xff]   ;;  %v1272_v49 = vld [vmem:[%s1740_s5 + $0xe0] ss:$28 sps:$4 sm:$0xff]  }
  0x2b   :  { %v1268_v46 = vld [vmem:[%s1740_s5 + $0xac] ss:$28 sps:$4 sm:$0xff]   ;;  %v1274_v48 = vld [vmem:[%s1740_s5 + $0xe4] ss:$28 sps:$4 sm:$0xff]   ;;  %v1280_v50 = vld [vmem:[%s1740_s5 + $0x11c] ss:$28 sps:$4 sm:$0xff]  }
  0x2c   :  { %1175 = vmatpush3.bf16.msra.mxu1 %v1239_v17  ;;  %v1278_v51 = vld [vmem:[%s1740_s5 + $0x118] ss:$28 sps:$4 sm:$0xff]   ;;  %v1022_v52 = vld [vmem:[%s1737_s2 + $0x3] ss:$0 sm:$0xff]  ;;  %v1031_v57 = vld [vmem:[%s1737_s2 + $0x4] ss:$0 sm:$0xff] }
  0x2d   :  { %1185 = vmatpush3.bf16.msra.mxu0 %v1242_v20  ;;  %793 = vmatprep.subr.bf16.mxu1 %v1250_v40  ;;  %v1032_v61 = vld [vmem:[%s1737_s2 + $0x5] ss:$0 sm:$0xff]  ;;  %v1257_v4 = vld [vmem:[%s1740_s5 + $0x40] ss:$28 sps:$4 sm:$0xff]   ;;  %v1263_v6 = vld [vmem:[%s1740_s5 + $0x78] ss:$28 sps:$4 sm:$0xff]  }
  0x2e   :  { %1186 = vmatprep.subr.bf16.mxu0 %v1366_v1  ;;  %v1251_v0 = vld [vmem:[%s1740_s5 + $0x8] ss:$28 sps:$4 sm:$0xff]   ;;  %v1265_v5 = vld [vmem:[%s1740_s5 + $0x7c] ss:$28 sps:$4 sm:$0xff]   ;;  %v1271_v7 = vld [vmem:[%s1740_s5 + $0xb4] ss:$28 sps:$4 sm:$0xff]  }
  0x2f   :  { %v1259_v3 = vld [vmem:[%s1740_s5 + $0x44] ss:$28 sps:$4 sm:$0xff]   ;;  %v1269_v8 = vld [vmem:[%s1740_s5 + $0xb0] ss:$28 sps:$4 sm:$0xff]   ;;  %v1289_v14 = vld [vmem:[%s1740_s5 + $0x15c] ss:$28 sps:$4 sm:$0xff]  }
  0x30   :  { %v1277_v9 = vld [vmem:[%s1740_s5 + $0xec] ss:$28 sps:$4 sm:$0xff]   ;;  %v1283_v11 = vld [vmem:[%s1740_s5 + $0x124] ss:$28 sps:$4 sm:$0xff]   ;;  %v1286_v13 = vld [vmem:[%s1740_s5 + $0x154] ss:$28 sps:$4 sm:$0xff]  }
  0x31   :  { %1187 = vmatpush3.bf16.msra.mxu0 %v1243_v21  ;;  %v1275_v10 = vld [vmem:[%s1740_s5 + $0xe8] ss:$28 sps:$4 sm:$0xff]   ;;  %v1281_v12 = vld [vmem:[%s1740_s5 + $0x120] ss:$28 sps:$4 sm:$0xff]   ;;  %v1284_v15 = vld [vmem:[%s1740_s5 + $0x150] ss:$28 sps:$4 sm:$0xff]  }
  0x32   :  { %1188 = vmatprep.subr.bf16.mxu0 %v1366_v1  ;;  %v1287_v16 = vld [vmem:[%s1740_s5 + $0x158] ss:$28 sps:$4 sm:$0xff]   ;;  %v1292_v17 = vld [vmem:[%s1740_s5 + $0x18c] ss:$28 sps:$4 sm:$0xff]  }
  0x33   :  { %v1295_v18 = vld [vmem:[%s1740_s5 + $0x194] ss:$28 sps:$4 sm:$0xff]   ;;  %v1290_v19 = vld [vmem:[%s1740_s5 + $0x188] ss:$28 sps:$4 sm:$0xff]  }
  0x34   :  { %v1293_v20 = vld [vmem:[%s1740_s5 + $0x190] ss:$28 sps:$4 sm:$0xff]  }
  0x35   :  { %1189 = vmatpush3.bf16.msra.mxu0 %v1244_v22  ;;  %v1298_v21 = vld [vmem:[%s1740_s5 + $0x14] ss:$28 sps:$4 sm:$0xff]   ;;  %v1368_v22 = vmov 0  }
  0x36   :  { %1190 = vmatprep.subr.bf16.mxu0 %v1366_v1  ;;  %v1303_v40 = vld [vmem:[%s1740_s5 + $0x50] ss:$28 sps:$4 sm:$0xff]  }
  0x39   :  { %1191 = vmatpush3.bf16.msra.mxu0 %v1245_v36  ;;  %v1299_v36 = vld [vmem:[%s1740_s5 + $0x18] ss:$28 sps:$4 sm:$0xff]  }
  0x3a   :  { %1192 = vmatprep.subr.bf16.mxu0 %v1366_v1 }
  0x3d   :  { %1193 = vmatpush3.bf16.msra.mxu0 %v1246_v37 }
  0x3e   :  { %1194 = vmatprep.subr.bf16.mxu0 %v1366_v1 }
  0x41   :  { %1195 = vmatpush3.bf16.msra.mxu0 %v1247_v38  ;;  %v1302_v38 = vld [vmem:[%s1740_s5 + $0x4c] ss:$28 sps:$4 sm:$0xff]  }
  0x42   :  { %834 = vmatprep.subr.bf16.mxu0 %v1253_v41  ;;  %v1306_v41 = vld [vmem:[%s1740_s5 + $0x84] ss:$28 sps:$4 sm:$0xff]  }
  0xf4   :  { %v140_v24 = vpop.f32.mrb[0].mxu0 }
  0xf5   :  { %v141_v25 = vadd.f32 %v1011_v23, %v140_v24  ;;  %v1158_v26 = vpop.f32.mrb[1].mxu0  ;;  %v1033_v23 = vld [vmem:[%s1737_s2 + $0x6] ss:$0 sm:$0xff] }
  0xf6   :  { %v143_v27 = vpop.f32.mrb[2].mxu0 }
  0xf7   :  { %vm146_vm1 = vcmp.gt.f32.partialorder %v141_v25, 0.0  ;;  %v147_v29 = vmul.f32 0.3, %v141_v25  ;;  %v1159_v30 = vpop.f32.mrb[3].mxu0 }
  0xf9   :  { %v148_v31 = vsel %vm146_vm1, %v141_v25, %v147_v29 }
  0xfa   :  { %v153_v33 = vmul.f32 %v1020_v28, %v148_v31  ;;  %v1042_v28 = vld [vmem:[%s1737_s2 + $0x7] ss:$0 sm:$0xff] }
  0xfc   :  { %v158_v34 = vadd.f32 %v1021_v32, %v153_v33  ;;  %v1043_v32 = vld [vmem:[%s1737_s2 + $0x8] ss:$0 sm:$0xff] }
  0xfe   :  { %v159_v35 = vpack.c.bf16 %v158_v34, %v158_v34 }
 0x100   :  { %1177 = vmatmul.mubr.bf16.vlgmr.msra.gmra.mrb[0].mxu1 %v159_v35  ;;  %v1296_v35 = vld [vmem:[%s1740_s5 + $0x10] ss:$28 sps:$4 sm:$0xff]  }
 0x101   :  { %794 = vmatpush1.bf16.msra.mxu1 %v1248_v39  ;;  %825 = vmatprep.mubr.bf16.mxu1 %v1368_v22  ;;  %v1300_v39 = vld [vmem:[%s1740_s5 + $0x48] ss:$28 sps:$4 sm:$0xff]  }
 0x102   :  { %795 = vmatprep.subr.bf16.mxu1 %v1256_v42  ;;  %v1304_v42 = vld [vmem:[%s1740_s5 + $0x80] ss:$28 sps:$4 sm:$0xff]  }
 0x105   :  { %796 = vmatpush1.bf16.msra.mxu1 %v1254_v43  ;;  %v1307_v43 = vld [vmem:[%s1740_s5 + $0x88] ss:$28 sps:$4 sm:$0xff]  }
 0x106   :  { %797 = vmatprep.subr.bf16.mxu1 %v1262_v44  ;;  %v1310_v44 = vld [vmem:[%s1740_s5 + $0xbc] ss:$28 sps:$4 sm:$0xff]  }
 0x109   :  { %798 = vmatpush1.bf16.msra.mxu1 %v1260_v45  ;;  %v1308_v45 = vld [vmem:[%s1740_s5 + $0xb8] ss:$28 sps:$4 sm:$0xff]  }
 0x10a   :  { %799 = vmatprep.subr.bf16.mxu1 %v1268_v46  ;;  %v1311_v46 = vld [vmem:[%s1740_s5 + $0xc0] ss:$28 sps:$4 sm:$0xff]  }
 0x10d   :  { %800 = vmatpush1.bf16.msra.mxu1 %v1266_v47  ;;  %v1314_v47 = vld [vmem:[%s1740_s5 + $0xf4] ss:$28 sps:$4 sm:$0xff]  }
 0x10e   :  { %801 = vmatprep.subr.bf16.mxu1 %v1274_v48  ;;  %v1312_v48 = vld [vmem:[%s1740_s5 + $0xf0] ss:$28 sps:$4 sm:$0xff]  }
 0x111   :  { %802 = vmatpush1.bf16.msra.mxu1 %v1272_v49  ;;  %v1315_v49 = vld [vmem:[%s1740_s5 + $0xf8] ss:$28 sps:$4 sm:$0xff]  }
 0x112   :  { %803 = vmatprep.subr.bf16.mxu1 %v1280_v50  ;;  %v1318_v50 = vld [vmem:[%s1740_s5 + $0x12c] ss:$28 sps:$4 sm:$0xff]  }
 0x115   :  { %804 = vmatpush1.bf16.msra.mxu1 %v1278_v51  ;;  %v1316_v51 = vld [vmem:[%s1740_s5 + $0x128] ss:$28 sps:$4 sm:$0xff]  }
 0x116   :  { %805 = vmatprep.subr.bf16.mxu1 %v1286_v13 }
 0x119   :  { %806 = vmatpush1.bf16.msra.mxu1 %v1284_v15 }
 0x11a   :  { %807 = vmatprep.subr.bf16.mxu1 %v1292_v17 }
 0x11d   :  { %808 = vmatpush1.bf16.msra.mxu1 %v1290_v19 }
 0x11e   :  { %875 = vmatprep.subr.bf16.mxu1 %v1298_v21 }
 0x1d3   :  { %v262_v53 = vpop.f32.mrb[0].mxu1 }
 0x1d4   :  { %v263_v54 = vadd.f32 %v1022_v52, %v262_v53  ;;  %v1178_v55 = vpop.f32.mrb[1].mxu1  ;;  %v1319_v52 = vld [vmem:[%s1740_s5 + $0x130] ss:$28 sps:$4 sm:$0xff]   ;;  %v1322_v53 = vld [vmem:[%s1740_s5 + $0x164] ss:$28 sps:$4 sm:$0xff]  }
 0x1d5   :  { %v265_v56 = vpop.f32.mrb[2].mxu1  ;;  %v1323_v55 = vld [vmem:[%s1740_s5 + $0x168] ss:$28 sps:$4 sm:$0xff]  }
 0x1d6   :  { %vm268_vm2 = vcmp.gt.f32.partialorder %v263_v54, 0.0  ;;  %v269_v58 = vmul.f32 0.3, %v263_v54  ;;  %v1179_v59 = vpop.f32.mrb[3].mxu1  ;;  %v1326_v56 = vld [vmem:[%s1740_s5 + $0x19c] ss:$28 sps:$4 sm:$0xff]  }
 0x1d7   :  { %v470_v59 = vlaneseq }
 0x1d8   :  { %v270_v60 = vsel %vm268_vm2, %v263_v54, %v269_v58  ;;  %v1320_v54 = vld [vmem:[%s1740_s5 + $0x160] ss:$28 sps:$4 sm:$0xff]  }
 0x1d9   :  { %v275_v62 = vmul.f32 %v1031_v57, %v270_v60  ;;  %v1324_v57 = vld [vmem:[%s1740_s5 + $0x198] ss:$28 sps:$4 sm:$0xff]   ;;  %v1327_v58 = vld [vmem:[%s1740_s5 + $0x1a0] ss:$28 sps:$4 sm:$0xff]   ;;  %v471_v60 = vshrl.u32 %v470_v59, 7  ;;  %s1369_s5 = smov [#allocation2]  }
 0x1db   :  { %v280_v63 = vadd.f32 %v1032_v61, %v275_v62  ;;  %v472_v61 = vsub.s32 0, %v471_v60  ;;  %v480_v62 = vsub.s32 2, %v471_v60 }
 0x1dd   :  { %v281_v2 = vpack.c.bf16 %v280_v63, %v280_v63  ;;  %v468_v63 = vld [vmem:[%s1741_s6] sm:$0x7f]  ;;  %s1003_s6 = sshll.u32 %s1369_s5, 4  ;;  %s1004_s6 = int_to_ptr.vmem [resolvable:$true] %s1003_s6 }
 0x1de   :  { %s1342_s20 = scalar_lea.vmem %s1004_s6, 448  ;;  %p1347_p1 = scmp.lt.s32.totalorder %s1004_s6, %s1004_s6 }
 0x1df   :  { %1197 = vmatmul.mubr.bf16.vlgmr.msra.gmra.mrb[4].mxu0 %v281_v2  ;;  %v484_v2 = vsub.s32 3, %v471_v60  ;;  %p1343_p0 = scmp.ne.s32.totalorder %s1004_s6, %s1342_s20  ;;  %p1348_p2 = scmp.lt.s32.totalorder %s1342_s20, %s1342_s20 }
 0x1e0   :  { %835 = vmatpush1.bf16.msra.mxu0 %v1251_v0  ;;  %866 = vmatprep.mubr.bf16.mxu0 %v1368_v22  ;;  %v476_v0 = vsub.s32 1, %v471_v60 }
 0x1e1   :  { %836 = vmatprep.subr.bf16.mxu0 %v1259_v3  ;;  %v473_v3 = vrot.slane %v468_v63, %v472_v61  ;;  %p1349_p3 = por %p1348_p2, %p1347_p1 }
 0x1e3   :  { %p1350_p4 = pnand %p1349_p3, %p1343_p0 }
 0x1e4   :  { %837 = vmatpush1.bf16.msra.mxu0 %v1257_v4  ;;  %v481_v4 = vrot.slane %v468_v63, %v480_v62 }
 0x1e5   :  { %838 = vmatprep.subr.bf16.mxu0 %v1265_v5  ;;  %v477_v5 = vrot.slane %v468_v63, %v476_v0 }
 0x1e8   :  { %839 = vmatpush1.bf16.msra.mxu0 %v1263_v6  ;;  %v485_v6 = vrot.slane %v468_v63, %v484_v2 }
 0x1e9   :  { %840 = vmatprep.subr.bf16.mxu0 %v1271_v7 }
 0x1ec   :  { %841 = vmatpush1.bf16.msra.mxu0 %v1269_v8 }
 0x1ed   :  { %842 = vmatprep.subr.bf16.mxu0 %v1277_v9 }
 0x1f0   :  { %843 = vmatpush1.bf16.msra.mxu0 %v1275_v10 }
 0x1f1   :  { %844 = vmatprep.subr.bf16.mxu0 %v1283_v11 }
 0x1f4   :  { %845 = vmatpush1.bf16.msra.mxu0 %v1281_v12 }
 0x1f5   :  { %846 = vmatprep.subr.bf16.mxu0 %v1289_v14 }
 0x1f8   :  { %847 = vmatpush1.bf16.msra.mxu0 %v1287_v16 }
 0x1f9   :  { %848 = vmatprep.subr.bf16.mxu0 %v1295_v18 }
 0x1fc   :  { %849 = vmatpush1.bf16.msra.mxu0 %v1293_v20 }
 0x1fd   :  { %1200 = vmatprep.subr.bf16.mxu0 %v1366_v1 }
 0x2b2   :  { %v384_v24 = vpop.f32.mrb[4].mxu0 }
 0x2b3   :  { %v385_v25 = vadd.f32 %v1033_v23, %v384_v24  ;;  %v1198_v26 = vpop.f32.mrb[5].mxu0 }
 0x2b4   :  { %v387_v27 = vpop.f32.mrb[6].mxu0 }
 0x2b5   :  { %vm390_vm3 = vcmp.gt.f32.partialorder %v385_v25, 0.0  ;;  %v391_v29 = vmul.f32 0.3, %v385_v25  ;;  %v1199_v30 = vpop.f32.mrb[7].mxu0 }
 0x2b6   :  { %v492_v30 = vsub.s32 5, %v471_v60 }
 0x2b7   :  { %v392_v31 = vsel %vm390_vm3, %v385_v25, %v391_v29  ;;  %v496_v29 = vsub.s32 6, %v471_v60 }
 0x2b8   :  { %v397_v33 = vmul.f32 %v1042_v28, %v392_v31  ;;  %v488_v28 = vsub.s32 4, %v471_v60 }
 0x2ba   :  { %v402_v34 = vadd.f32 %v1043_v32, %v397_v33  ;;  %v489_v31 = vrot.slane %v468_v63, %v488_v28  ;;  %v497_v32 = vrot.slane %v468_v63, %v496_v29  ;;  %v493_v33 = vrot.slane %v468_v63, %v492_v30 }
 0x2bc   :  { %v403_v37 = vpack.c.bf16 %v402_v34, %v402_v34 }
 0x2be   :  { %826 = vmatmul.mubr.bf16.vlgmr.msra.gmra.mrb[4].mxu1 %v403_v37  ;;  %867 = vmatmul.mubr.bf16.vlgmr.msra.gmra.mrb[8].mxu0 %v403_v37 }
 0x2bf   :  { %876 = vmatpush1.bf16.msra.mxu1 %v1296_v35  ;;  %1201 = vmatpush3.bf16.msra.mxu0 %v1299_v36 }
 0x2c0   :  { %877 = vmatprep.subr.bf16.mxu1 %v1302_v38  ;;  %1202 = vmatprep.subr.bf16.mxu0 %v1366_v1 }
 0x2c1   :  { %907 = vmatprep.mubr.bf16.mxu1 %v1368_v22  ;;  %1216 = vmatprep.mubr.msk.bf16.mxu0 %vm1367_vm0, %v1366_v1 }
 0x2c3   :  { %878 = vmatpush1.bf16.msra.mxu1 %v1300_v39  ;;  %1203 = vmatpush3.bf16.msra.mxu0 %v1303_v40 }
 0x2c4   :  { %879 = vmatprep.subr.bf16.mxu1 %v1306_v41  ;;  %1204 = vmatprep.subr.bf16.mxu0 %v1366_v1 }
 0x2c7   :  { %880 = vmatpush1.bf16.msra.mxu1 %v1304_v42  ;;  %1205 = vmatpush3.bf16.msra.mxu0 %v1307_v43 }
 0x2c8   :  { %881 = vmatprep.subr.bf16.mxu1 %v1310_v44  ;;  %1206 = vmatprep.subr.bf16.mxu0 %v1366_v1 }
 0x2cb   :  { %882 = vmatpush1.bf16.msra.mxu1 %v1308_v45  ;;  %1207 = vmatpush3.bf16.msra.mxu0 %v1311_v46 }
 0x2cc   :  { %883 = vmatprep.subr.bf16.mxu1 %v1314_v47  ;;  %1208 = vmatprep.subr.bf16.mxu0 %v1366_v1 }
 0x2cf   :  { %884 = vmatpush1.bf16.msra.mxu1 %v1312_v48  ;;  %1209 = vmatpush3.bf16.msra.mxu0 %v1315_v49 }
 0x2d0   :  { %885 = vmatprep.subr.bf16.mxu1 %v1318_v50  ;;  %1210 = vmatprep.subr.bf16.mxu0 %v1366_v1 }
 0x2d3   :  { %886 = vmatpush1.bf16.msra.mxu1 %v1316_v51  ;;  %1211 = vmatpush3.bf16.msra.mxu0 %v1319_v52 }
 0x2d4   :  { %887 = vmatprep.subr.bf16.mxu1 %v1322_v53  ;;  %1212 = vmatprep.subr.bf16.mxu0 %v1366_v1 }
 0x2d7   :  { %888 = vmatpush1.bf16.msra.mxu1 %v1320_v54  ;;  %1213 = vmatpush3.bf16.msra.mxu0 %v1323_v55 }
 0x2d8   :  { %889 = vmatprep.subr.bf16.mxu1 %v1326_v56  ;;  %1214 = vmatprep.subr.bf16.mxu0 %v1366_v1 }
 0x2db   :  { %890 = vmatpush1.bf16.msra.mxu1 %v1324_v57  ;;  %1215 = vmatpush3.bf16.msra.mxu0 %v1327_v58 }
 0x2de   :  { %908 = vmatmul.mubr.bf16.vlgmr.msra.gmra.mrb[8].mxu1 %v403_v37  ;;  %1217 = vmatmul.mubr.bf16.vlgmr.msra.gmra.mrb[12].mxu0 %v403_v37 }
 0x391   :  { %v827_v7 = vpop.f32.mrb[4].mxu1  ;;  %v868_v1 = vpop.f32.mrb[8].mxu0 }
 0x392   :  { %v828_v8 = vadd.f32 %v827_v7, %v473_v3  ;;  %v869_v9 = vadd.f32 %v868_v1, %v481_v4  ;;  %v829_v10 = vpop.f32.mrb[5].mxu1  ;;  %v870_v11 = vpop.f32.mrb[9].mxu0 }
 0x393   :  { %v830_v12 = vadd.f32 %v829_v10, %v477_v5  ;;  %v871_v13 = vadd.f32 %v870_v11, %v485_v6  ;;  %v831_v14 = vpop.f32.mrb[6].mxu1  ;;  %v872_v15 = vpop.f32.mrb[10].mxu0 }
 0x394   :  { %v956_v16 = vpack.c.bf16 %v828_v8, %v828_v8  ;;  %v958_v17 = vpack.c.bf16 %v869_v9, %v869_v9  ;;  %v832_v18 = vpop.f32.mrb[7].mxu1  ;;  %v873_v19 = vpop.f32.mrb[11].mxu0 }
 0x395   :  { %v957_v20 = vpack.c.bf16 %v830_v12, %v830_v12  ;;  %v959_v21 = vpack.c.bf16 %v871_v13, %v871_v13 }
 0x396   :  { %1328 = vtanh.bf16 %v956_v16 }
 0x397   :  { %1330 = vtanh.bf16 %v958_v17 }
 0x398   :  { %1332 = vtanh.bf16 %v957_v20 }
 0x399   :  { %1334 = vtanh.bf16 %v959_v21 }
 0x3a1   :  { %v1329_v22 = vpop.eup %1328 }
 0x3a2   :  { %v1331_v23 = vpop.eup %1330 }
 0x3a3   :  { %v1333_v24 = vpop.eup %1332 }
 0x3a4   :  { %v1335_v25 = vpop.eup %1334  ;;  %v1100_v26 = vcombine.low %v1329_v22, %v1333_v24 }
 0x3a5   :  { %v1101_v27 = vcombine.low %v1331_v23, %v1335_v25 }
 0x3a6   :  { %992 = vst [vmem:[#allocation2] sm:$0xff] %v1100_v26 }
 0x3a7   :  { %993 = vst [vmem:[#allocation2 + $0x8] sm:$0xff] %v1101_v27 }
 0x3b1   :  { %v909_v34 = vpop.f32.mrb[8].mxu1  ;;  %v950_v35 = vpop.f32.mrb[12].mxu0 }
 0x3b2   :  { %v910_v36 = vadd.f32 %v909_v34, %v489_v31  ;;  %v951_v37 = vadd.f32 %v950_v35, %v497_v32  ;;  %v911_v38 = vpop.f32.mrb[9].mxu1  ;;  %v1218_v39 = vpop.f32.mrb[13].mxu0 }
 0x3b3   :  { %v912_v40 = vadd.f32 %v911_v38, %v493_v33  ;;  %v913_v41 = vpop.f32.mrb[10].mxu1  ;;  %v953_v42 = vpop.f32.mrb[14].mxu0 }
 0x3b4   :  { %v960_v43 = vpack.c.bf16 %v910_v36, %v910_v36  ;;  %v962_v44 = vpack.c.bf16 %v951_v37, %v951_v37  ;;  %v914_v45 = vpop.f32.mrb[11].mxu1  ;;  %v1219_v46 = vpop.f32.mrb[15].mxu0 }
 0x3b5   :  { %v961_v47 = vpack.c.bf16 %v912_v40, %v912_v40 }
 0x3b6   :  { %1336 = vtanh.bf16 %v960_v43 }
 0x3b7   :  { %1338 = vtanh.bf16 %v962_v44 }
 0x3b8   :  { %1340 = vtanh.bf16 %v961_v47 }
 0x3c1   :  { %v1337_v48 = vpop.eup %1336 }
 0x3c2   :  { %v1339_v49 = vpop.eup %1338 }
 0x3c3   :  { %v1341_v50 = vpop.eup %1340  ;;  %v1103_v51 = vcombine.low %v1339_v49, %v1339_v49 }
 0x3c4   :  { %v1102_v52 = vcombine.low %v1337_v48, %v1341_v50 }
 0x3c5   :  { %996 = vst.msk [vmem:[#allocation2 + $0x18] sm:$0xf] %vm995_vm4, %v1103_v51 }
 0x3c6   :  { %994 = vst [vmem:[#allocation2 + $0x10] sm:$0xff] %v1102_v52 }
 0x3c7   :  { %1353 = shalt.err (!%p1350_p4)
}
 0x3c8   :  { %s1354_s23 = scalar_lea.hbm %s1742_s7, 448 }
 0x3c9   :  { %p1355_p5 = scmp.ne.s32.totalorder %s1742_s7, %s1354_s23  ;;  %p1358_p6 = scmp.lt.u32.totalorder %s1354_s23, %s1742_s7 }
 0x3cb   :  { %p1360_p7 = pnand %p1358_p6, %p1355_p5 }
 0x3cd   :  { %1363 = shalt.err (!%p1360_p7)
}
 0x3ce   :  { %1006 = dma.vmem_to_hbm [thread:$0]  %s1004_s6, 448, %s1742_s7, [#allocation3]  }
 0x3cf   :  { %1364 = dma.done.wait [#allocation3], 448  }
 0x3d0   :  { %1365 = vsyncadd [#allocation3], 4294966848 }
 0x3d1   :  { %1010 = vsyncpa [#allocation3], 1 }

</bundles_post_ra>
